<compile_context>
chip_gen: v5e
topology: v5e:2x2
jax: 0.10.0
libtpu: 0.0.40
codegen_flags: <defaults>
</compile_context>

<pallas_src>
import functools

import jax
import jax.numpy as jnp
from jax.experimental import pallas as pl
from jax.experimental.pallas import tpu as pltpu

BN_EPS = 1e-5
LANE = 128
SUBLANE = 8


def _round_up(n, m):
    return (n + m - 1) // m * m


def _encoder_kernel(*refs, n_layers, use_bn, affine, valid_b, matmul_dtype):
    """Fused Linear -> ReLU -> BatchNorm1d stack for ONE batch (one grid step).

    refs:
      x_ref  : (B_pad, Dpad) f32      zero-padded input activations
      w_ref  : (n_layers, Dpad, Dpad) packed, zero-padded, pre-transposed weights
      b_ref  : (n_layers, Dpad)       packed, zero-padded biases
      gb_ref : (2*n_layers, Dpad)     packed gamma/beta (only if use_bn and affine)
      o_ref  : (B_pad, Dpad) f32
    """
    x_ref, w_ref, b_ref = refs[0], refs[1], refs[2]
    idx = 3
    if use_bn and affine:
        gb_ref = refs[idx]
        idx += 1
    o_ref = refs[idx]

    b_pad = x_ref.shape[0]
    y = x_ref[...]                                   # f32, lane-dense (B_pad, Dpad)

    # Row mask (hoisted out of the layer loop) -- only when the batch was padded:
    # padded rows pick up the bias after the first Linear and would otherwise
    # corrupt the BatchNorm batch statistics.
    need_mask = use_bn and (valid_b != b_pad)
    if need_mask:
        row_ids = jax.lax.broadcasted_iota(jnp.int32, (b_pad, 1), 0)
        row_mask = (row_ids < valid_b).astype(jnp.float32)
        inv_b = 1.0 / float(valid_b)

    for l in range(n_layers):
        w = w_ref[l]                                  # (Dpad, Dpad), static index
        b = b_ref[l:l + 1, :]                         # (1, Dpad), static slice
        # Linear (MXU) + bias.  Pad rows/cols of w and pad lanes of b are zero,
        # so pad lanes of y stay exactly zero through the whole stack.
        y = jnp.dot(y.astype(matmul_dtype), w.astype(matmul_dtype),
                    preferred_element_type=jnp.float32) + b
        # ReLU (VPU)
        y = jnp.maximum(y, 0.0)
        if use_bn:
            # BatchNorm1d, training-mode statistics: per-feature batch mean,
            # biased variance, eps=1e-5.
            if need_mask:
                mean = jnp.sum(y * row_mask, axis=0, keepdims=True) * inv_b
                yc = y - mean
                var = jnp.sum((yc * yc) * row_mask, axis=0, keepdims=True) * inv_b
            else:
                mean = jnp.mean(y, axis=0, keepdims=True)
                yc = y - mean                          # centered, computed once
                var = jnp.mean(yc * yc, axis=0, keepdims=True)
            y = yc * jax.lax.rsqrt(var + BN_EPS)       # rsqrt -> EUP slot
            if affine:
                y = (y * gb_ref[l:l + 1, :]
                     + gb_ref[n_layers + l:n_layers + l + 1, :])

    o_ref[...] = y.astype(o_ref.dtype)


def context_encoder_forward(x, w_packed, b_packed, gb_packed=None, *,
                            valid_b, use_bn=True, affine=False,
                            matmul_dtype=jnp.float32):
    """x: (C, B_pad, Dpad) f32, zero-padded.  Returns (C, B_pad, Dpad) f32."""
    C, B_pad, Dpad = x.shape
    n_layers = int(w_packed.shape[0])

    inputs = [x, w_packed, b_packed]
    in_specs = [
        # One grid step = one full batch (required for per-batch BN statistics).
        pl.BlockSpec((None, B_pad, Dpad), lambda c: (c, 0, 0)),
        # Weight slab: same (full) block every step -> DMA'd once, stays resident.
        pl.BlockSpec((n_layers, Dpad, Dpad), lambda c: (0, 0, 0)),
        pl.BlockSpec((n_layers, Dpad), lambda c: (0, 0)),
    ]
    if use_bn and affine:
        inputs.append(gb_packed)
        in_specs.append(pl.BlockSpec((2 * n_layers, Dpad), lambda c: (0, 0)))

    kernel = functools.partial(
        _encoder_kernel, n_layers=n_layers, use_bn=use_bn, affine=affine,
        valid_b=valid_b, matmul_dtype=matmul_dtype)

    flops = 2 * C * B_pad * n_layers * Dpad * Dpad
    bytes_accessed = (sum(int(a.size) * a.dtype.itemsize for a in inputs)
                      + C * B_pad * Dpad * 4)
    cost = pl.CostEstimate(
        flops=int(flops),
        transcendentals=int(C * n_layers * Dpad) if use_bn else 0,
        bytes_accessed=int(bytes_accessed))

    return pl.pallas_call(
        kernel,
        out_shape=jax.ShapeDtypeStruct((C, B_pad, Dpad), jnp.float32),
        grid=(C,),
        in_specs=in_specs,
        out_specs=pl.BlockSpec((None, B_pad, Dpad), lambda c: (c, 0, 0)),
        compiler_params=pltpu.CompilerParams(
            dimension_semantics=("parallel",)),
        cost_estimate=cost,
    )(*inputs)


class ContextEncoderPallas:
    """JAX/Pallas re-implementation of vti.transforms.madede.ContextEncoder
    (activation='relu', use_batch_norm=True)."""

    def __init__(self, input_dim, hidden_dims, latent_dim, key, use_batch_norm=True):
        dims = [input_dim] + list(hidden_dims) + [latent_dim]
        self.input_dim = input_dim
        self.latent_dim = latent_dim
        self.use_bn = use_batch_norm
        self.n_layers = len(dims) - 1
        self.d_pad = _round_up(max(dims), LANE)

        # One zero-padded, lane-dense slab for all weights (pre-transposed to
        # (Din, Dout)) and one for all biases.  Pad entries MUST stay exactly 0.
        w_slab = jnp.zeros((self.n_layers, self.d_pad, self.d_pad), jnp.float32)
        b_slab = jnp.zeros((self.n_layers, self.d_pad), jnp.float32)
        for l, (din, dout) in enumerate(zip(dims[:-1], dims[1:])):
            key, kw, kb = jax.random.split(key, 3)
            # Deterministic init mimicking torch.nn.Linear default
            # (uniform +/- 1/sqrt(fan_in)).
            bound = 1.0 / (din ** 0.5)
            w = jax.random.uniform(kw, (din, dout), jnp.float32, -bound, bound)
            b = jax.random.uniform(kb, (dout,), jnp.float32, -bound, bound)
            w_slab = w_slab.at[l, :din, :dout].set(w)
            b_slab = b_slab.at[l, :dout].set(b)
        self.w_packed = w_slab
        self.b_packed = b_slab
        self.dims = dims

        # Fresh torch BatchNorm1d: gamma=1, beta=0 -> identity affine transform.
        # Skip it (and its DMA) at compile time; load trained params to enable.
        self.affine = False
        self.gb_packed = None

    def load_batchnorm_affine(self, gammas, betas):
        """Enable the affine BN step with trained gamma/beta (one per layer)."""
        gb = jnp.zeros((2 * self.n_layers, self.d_pad), jnp.float32)
        for l, (g, bt) in enumerate(zip(gammas, betas)):
            g = jnp.asarray(g, jnp.float32)
            bt = jnp.asarray(bt, jnp.float32)
            gb = gb.at[l, :g.shape[0]].set(g)
            gb = gb.at[self.n_layers + l, :bt.shape[0]].set(bt)
        self.gb_packed = gb
        self.affine = True

    def __call__(self, x):
        """x: (B, input_dim) or (C, B, input_dim) -> (B, latent) / (C, B, latent)."""
        squeeze = (x.ndim == 2)
        if squeeze:
            x = x[None]
        C, B, L = x.shape
        # Keep B a multiple of 8 (f32 sublane tile); BN stats stay exact via the
        # compile-time row mask in the kernel when padding is needed.
        B_pad = _round_up(max(B, SUBLANE), SUBLANE)
        xp = jnp.zeros((C, B_pad, self.d_pad), jnp.float32)
        xp = xp.at[:, :B, :L].set(x.astype(jnp.float32))

        out = context_encoder_forward(
            xp, self.w_packed, self.b_packed, self.gb_packed,
            valid_b=B, use_bn=self.use_bn, affine=self.affine)

        out = out[:, :B, :self.latent_dim]            # lane-dense slab -> real dims
        return out[0] if squeeze else out


if __name__ == "__main__":
    key = jax.random.PRNGKey(0)
    k_x, k_params = jax.random.split(key)

    batch = 8
    input_dim = 16
    hidden_dims = [32, 32]
    latent_dim = 16

    # Binary input string of length L=input_dim (module operates on (B, L) floats).
    x = (jax.random.uniform(k_x, (batch, input_dim)) > 0.5).astype(jnp.float32)

    model = ContextEncoderPallas(input_dim, hidden_dims, latent_dim, k_params,
                                 use_batch_norm=True)
    out = jax.block_until_ready(model(x))

    assert out.shape == (batch, latent_dim)
    assert bool(jnp.all(jnp.isfinite(out)))
    print("KERNEL_OK")
</pallas_src>

<mosaic_0001>
module attributes {stable_mosaic.version = 11 : i64} {
  func.func @_encoder_kernel(%arg0: i32, %arg1: memref<1x8x128xf32, #tpu.memory_space<vmem>>, %arg2: memref<3x128x128xf32, #tpu.memory_space<vmem>>, %arg3: memref<3x128xf32, #tpu.memory_space<vmem>>, %arg4: memref<1x8x128xf32, #tpu.memory_space<vmem>>) attributes {dimension_semantics = [#tpu.dimension_semantics<parallel>], iteration_bounds = array<i64: 1>, scalar_prefetch = 0 : i64, scratch_operands = 0 : i64, tpu.core_type = #tpu.core_type<tc>, window_params = [{transform_indices = @transform_0, window_bounds = array<i64: 1, 8, 128>}, {pipeline_mode = #tpu.pipeline_mode<synchronous>, transform_indices = @transform_1, window_bounds = array<i64: 3, 128, 128>}, {pipeline_mode = #tpu.pipeline_mode<synchronous>, transform_indices = @transform_2, window_bounds = array<i64: 3, 128>}, {transform_indices = @transform_3, window_bounds = array<i64: 1, 8, 128>}]} {
    %c0 = arith.constant 0 : index
    %c0_0 = arith.constant 0 : index
    %c0_1 = arith.constant 0 : index
    %0 = vector.load %arg1[%c0, %c0_0, %c0_1] : memref<1x8x128xf32, #tpu.memory_space<vmem>>, vector<1x8x128xf32>
    %1 = vector.shape_cast %0 : vector<1x8x128xf32> to vector<8x128xf32>
    %c0_2 = arith.constant 0 : index
    %c0_3 = arith.constant 0 : index
    %c0_4 = arith.constant 0 : index
    %2 = vector.load %arg2[%c0_2, %c0_3, %c0_4] : memref<3x128x128xf32, #tpu.memory_space<vmem>>, vector<1x128x128xf32>
    %3 = vector.shape_cast %2 : vector<1x128x128xf32> to vector<128x128xf32>
    %c0_5 = arith.constant 0 : index
    %c0_6 = arith.constant 0 : index
    %4 = vector.load %arg3[%c0_5, %c0_6] : memref<3x128xf32, #tpu.memory_space<vmem>>, vector<1x128xf32>
    %cst = arith.constant dense<0.000000e+00> : vector<8x128xf32>
    %5 = tpu.matmul %1, %3, %cst {dimension_numbers = #tpu.dot_dimension_numbers<[1], [0], [0], [1], [0, 0, 1, 1], [], []>} : vector<8x128xf32>, vector<128x128xf32>, vector<8x128xf32> -> vector<8x128xf32>
    %6 = vector.broadcast %4 : vector<1x128xf32> to vector<8x128xf32>
    %7 = arith.addf %5, %6 : vector<8x128xf32>
    %cst_7 = arith.constant 0.000000e+00 : f32
    %8 = vector.broadcast %cst_7 : f32 to vector<8x128xf32>
    %9 = arith.maximumf %7, %8 : vector<8x128xf32>
    %cst_8 = arith.constant dense<0.000000e+00> : vector<128xf32>
    %10 = vector.multi_reduction <add>, %9, %cst_8 [0] : vector<8x128xf32> to vector<128xf32>
    %11 = vector.shape_cast %10 : vector<128xf32> to vector<1x128xf32>
    %cst_9 = arith.constant 8.000000e+00 : f32
    %12 = vector.broadcast %cst_9 : f32 to vector<1x128xf32>
    %13 = arith.divf %11, %12 : vector<1x128xf32>
    %14 = vector.broadcast %13 : vector<1x128xf32> to vector<8x128xf32>
    %15 = arith.subf %9, %14 : vector<8x128xf32>
    %16 = arith.mulf %15, %15 : vector<8x128xf32>
    %cst_10 = arith.constant dense<0.000000e+00> : vector<128xf32>
    %17 = vector.multi_reduction <add>, %16, %cst_10 [0] : vector<8x128xf32> to vector<128xf32>
    %18 = vector.shape_cast %17 : vector<128xf32> to vector<1x128xf32>
    %cst_11 = arith.constant 8.000000e+00 : f32
    %19 = vector.broadcast %cst_11 : f32 to vector<1x128xf32>
    %20 = arith.divf %18, %19 : vector<1x128xf32>
    %cst_12 = arith.constant 9.99999974E-6 : f32
    %21 = vector.broadcast %cst_12 : f32 to vector<1x128xf32>
    %22 = arith.addf %20, %21 : vector<1x128xf32>
    %23 = math.rsqrt %22 : vector<1x128xf32>
    %24 = vector.broadcast %23 : vector<1x128xf32> to vector<8x128xf32>
    %25 = arith.mulf %15, %24 : vector<8x128xf32>
    %c1 = arith.constant 1 : index
    %c0_13 = arith.constant 0 : index
    %c0_14 = arith.constant 0 : index
    %26 = vector.load %arg2[%c1, %c0_13, %c0_14] : memref<3x128x128xf32, #tpu.memory_space<vmem>>, vector<1x128x128xf32>
    %27 = vector.shape_cast %26 : vector<1x128x128xf32> to vector<128x128xf32>
    %c1_15 = arith.constant 1 : index
    %c0_16 = arith.constant 0 : index
    %28 = vector.load %arg3[%c1_15, %c0_16] : memref<3x128xf32, #tpu.memory_space<vmem>>, vector<1x128xf32>
    %cst_17 = arith.constant dense<0.000000e+00> : vector<8x128xf32>
    %29 = tpu.matmul %25, %27, %cst_17 {dimension_numbers = #tpu.dot_dimension_numbers<[1], [0], [0], [1], [0, 0, 1, 1], [], []>} : vector<8x128xf32>, vector<128x128xf32>, vector<8x128xf32> -> vector<8x128xf32>
    %30 = vector.broadcast %28 : vector<1x128xf32> to vector<8x128xf32>
    %31 = arith.addf %29, %30 : vector<8x128xf32>
    %cst_18 = arith.constant 0.000000e+00 : f32
    %32 = vector.broadcast %cst_18 : f32 to vector<8x128xf32>
    %33 = arith.maximumf %31, %32 : vector<8x128xf32>
    %cst_19 = arith.constant dense<0.000000e+00> : vector<128xf32>
    %34 = vector.multi_reduction <add>, %33, %cst_19 [0] : vector<8x128xf32> to vector<128xf32>
    %35 = vector.shape_cast %34 : vector<128xf32> to vector<1x128xf32>
    %cst_20 = arith.constant 8.000000e+00 : f32
    %36 = vector.broadcast %cst_20 : f32 to vector<1x128xf32>
    %37 = arith.divf %35, %36 : vector<1x128xf32>
    %38 = vector.broadcast %37 : vector<1x128xf32> to vector<8x128xf32>
    %39 = arith.subf %33, %38 : vector<8x128xf32>
    %40 = arith.mulf %39, %39 : vector<8x128xf32>
    %cst_21 = arith.constant dense<0.000000e+00> : vector<128xf32>
    %41 = vector.multi_reduction <add>, %40, %cst_21 [0] : vector<8x128xf32> to vector<128xf32>
    %42 = vector.shape_cast %41 : vector<128xf32> to vector<1x128xf32>
    %cst_22 = arith.constant 8.000000e+00 : f32
    %43 = vector.broadcast %cst_22 : f32 to vector<1x128xf32>
    %44 = arith.divf %42, %43 : vector<1x128xf32>
    %cst_23 = arith.constant 9.99999974E-6 : f32
    %45 = vector.broadcast %cst_23 : f32 to vector<1x128xf32>
    %46 = arith.addf %44, %45 : vector<1x128xf32>
    %47 = math.rsqrt %46 : vector<1x128xf32>
    %48 = vector.broadcast %47 : vector<1x128xf32> to vector<8x128xf32>
    %49 = arith.mulf %39, %48 : vector<8x128xf32>
    %c2 = arith.constant 2 : index
    %c0_24 = arith.constant 0 : index
    %c0_25 = arith.constant 0 : index
    %50 = vector.load %arg2[%c2, %c0_24, %c0_25] : memref<3x128x128xf32, #tpu.memory_space<vmem>>, vector<1x128x128xf32>
    %51 = vector.shape_cast %50 : vector<1x128x128xf32> to vector<128x128xf32>
    %c2_26 = arith.constant 2 : index
    %c0_27 = arith.constant 0 : index
    %52 = vector.load %arg3[%c2_26, %c0_27] : memref<3x128xf32, #tpu.memory_space<vmem>>, vector<1x128xf32>
    %cst_28 = arith.constant dense<0.000000e+00> : vector<8x128xf32>
    %53 = tpu.matmul %49, %51, %cst_28 {dimension_numbers = #tpu.dot_dimension_numbers<[1], [0], [0], [1], [0, 0, 1, 1], [], []>} : vector<8x128xf32>, vector<128x128xf32>, vector<8x128xf32> -> vector<8x128xf32>
    %54 = vector.broadcast %52 : vector<1x128xf32> to vector<8x128xf32>
    %55 = arith.addf %53, %54 : vector<8x128xf32>
    %cst_29 = arith.constant 0.000000e+00 : f32
    %56 = vector.broadcast %cst_29 : f32 to vector<8x128xf32>
    %57 = arith.maximumf %55, %56 : vector<8x128xf32>
    %cst_30 = arith.constant dense<0.000000e+00> : vector<128xf32>
    %58 = vector.multi_reduction <add>, %57, %cst_30 [0] : vector<8x128xf32> to vector<128xf32>
    %59 = vector.shape_cast %58 : vector<128xf32> to vector<1x128xf32>
    %cst_31 = arith.constant 8.000000e+00 : f32
    %60 = vector.broadcast %cst_31 : f32 to vector<1x128xf32>
    %61 = arith.divf %59, %60 : vector<1x128xf32>
    %62 = vector.broadcast %61 : vector<1x128xf32> to vector<8x128xf32>
    %63 = arith.subf %57, %62 : vector<8x128xf32>
    %64 = arith.mulf %63, %63 : vector<8x128xf32>
    %cst_32 = arith.constant dense<0.000000e+00> : vector<128xf32>
    %65 = vector.multi_reduction <add>, %64, %cst_32 [0] : vector<8x128xf32> to vector<128xf32>
    %66 = vector.shape_cast %65 : vector<128xf32> to vector<1x128xf32>
    %cst_33 = arith.constant 8.000000e+00 : f32
    %67 = vector.broadcast %cst_33 : f32 to vector<1x128xf32>
    %68 = arith.divf %66, %67 : vector<1x128xf32>
    %cst_34 = arith.constant 9.99999974E-6 : f32
    %69 = vector.broadcast %cst_34 : f32 to vector<1x128xf32>
    %70 = arith.addf %68, %69 : vector<1x128xf32>
    %71 = math.rsqrt %70 : vector<1x128xf32>
    %72 = vector.broadcast %71 : vector<1x128xf32> to vector<8x128xf32>
    %73 = arith.mulf %63, %72 : vector<8x128xf32>
    %c0_35 = arith.constant 0 : index
    %c0_36 = arith.constant 0 : index
    %c0_37 = arith.constant 0 : index
    %74 = vector.load %arg4[%c0_35, %c0_36, %c0_37] : memref<1x8x128xf32, #tpu.memory_space<vmem>>, vector<1x8x128xf32>
    %75 = vector.shape_cast %74 : vector<1x8x128xf32> to vector<8x128xf32>
    %76 = vector.shape_cast %73 : vector<8x128xf32> to vector<1x8x128xf32>
    tpu.vector_store %arg4[%c0_35, %c0_36, %c0_37], %76 {strides = array<i32>} : memref<1x8x128xf32, #tpu.memory_space<vmem>>, vector<1x8x128xf32>,
    return
  }
  func.func @transform_0(%arg0: i32) -> (i32, i32, i32) {
    %c0_i32 = arith.constant 0 : i32
    %c0_i32_0 = arith.constant 0 : i32
    %c0_i32_1 = arith.constant 0 : i32
    return %arg0, %c0_i32, %c0_i32_0 : i32, i32, i32
  }
  func.func @transform_1(%arg0: i32) -> (i32, i32, i32) {
    %c0_i32 = arith.constant 0 : i32
    %c0_i32_0 = arith.constant 0 : i32
    %c0_i32_1 = arith.constant 0 : i32
    %c0_i32_2 = arith.constant 0 : i32
    return %c0_i32, %c0_i32_0, %c0_i32_1 : i32, i32, i32
  }
  func.func @transform_2(%arg0: i32) -> (i32, i32) {
    %c0_i32 = arith.constant 0 : i32
    %c0_i32_0 = arith.constant 0 : i32
    %c0_i32_1 = arith.constant 0 : i32
    return %c0_i32, %c0_i32_0 : i32, i32
  }
  func.func @transform_3(%arg0: i32) -> (i32, i32, i32) {
    %c0_i32 = arith.constant 0 : i32
    %c0_i32_0 = arith.constant 0 : i32
    %c0_i32_1 = arith.constant 0 : i32
    return %arg0, %c0_i32, %c0_i32_0 : i32, i32, i32
  }
}

</mosaic_0001>

<bundles_post_ra>
// kernel: tpu_custom_call.1
= control target key start
LH: loop header
LB: loop body
LE: loop exit
PB: predicated region body
PF: predicated region fallthrough
CT: control target
= control target key end

     0   :  { %8 = vsyncpa [#allocation3], 0  ;;  %s455_s0 = inlined_call_operand.hbm [shape: f32[1,8,128], index: 0, kind: input, shape index: {}]   ;;  %s456_s1 = inlined_call_operand.hbm [shape: f32[3,128,128], index: 1, kind: input, shape index: {}]   ;;  %s457_s2 = inlined_call_operand.hbm [shape: f32[3,128], index: 2, kind: input, shape index: {}]   ;;  %s458_s3 = inlined_call_operand.hbm [shape: f32[1,8,128], index: 3, kind: output, shape index: {}]  }
   0x1   :  { %9 = vsyncpa [#allocation6], 0  ;;  %s26_s14 = sshll.u32 %s456_s1, 4  ;;  %s27_s14 = int_to_ptr.hbm [resolvable:$true] %s26_s14 }
   0x2   :  { %10 = vsyncpa [#allocation4], 0  ;;  %s408_s15 = smov [#allocation5]   ;;  %s16_s19 = sshll.u32 %s455_s0, 4  ;;  %s17_s19 = int_to_ptr.hbm [resolvable:$true] %s16_s19 }
   0x3   :  { %s28_s16 = sshll.u32 %s408_s15, 4  ;;  %s409_s20 = smov 128   ;;  %s29_s16 = int_to_ptr.vmem [resolvable:$true] %s28_s16 }
   0x4   :  { %s410_s21 = smov 8   ;;  %s411_s22 = smov [#allocation2]  }
   0x5   :  { %34 = dma.hbm_to_vmem [thread:$0]  %s27_s14, 6144, %s29_s16, [#allocation6], %s409_s20, %s409_s20, %s410_s21  }
   0x6   :  { %s18_s23 = sshll.u32 %s411_s22, 4  ;;  %s40_s26 = sshll.u32 %s457_s2, 4  ;;  %s19_s23 = int_to_ptr.vmem [resolvable:$true] %s18_s23  ;;  %s41_s26 = int_to_ptr.hbm [resolvable:$true] %s40_s26 }
   0x7   :  { %21 = dma.hbm_to_vmem [thread:$0]  %s17_s19, 128, %s19_s23, [#allocation3]  }
   0x8   :  { %s412_s1 = smov [#allocation7]  }
   0x9   :  { %s42_s27 = sshll.u32 %s412_s1, 4  ;;  %s43_s27 = int_to_ptr.vmem [resolvable:$true] %s42_s27 }
   0xa   :  { %45 = dma.hbm_to_vmem [thread:$0]  %s41_s26, 64, %s43_s27, [#allocation6]  }
   0xb   :  { %402 = dma.done.wait [#allocation3], 128  }
   0xc   :  { %403 = vsyncadd [#allocation3], 4294967168 }
   0xd   :  { %404 = dma.done.wait [#allocation6], 6208  }
   0xe   :  { %405 = vsyncadd [#allocation6], 4294961088  ;;  %v74_v0 = vld [vmem:[#allocation5 + $0x78] sm:$0xff]  ;;  %v73_v1 = vld [vmem:[#allocation5 + $0x70] sm:$0xff]  ;;  %v413_v24 = vmov 8.0   ;;  %s414_s0 = smov [#allocation8]  }
   0xf   :  { %77 = vmatpush.msra.mxu0 %v74_v0  ;;  %v72_v2 = vld [vmem:[#allocation5 + $0x68] sm:$0xff]  ;;  %v71_v3 = vld [vmem:[#allocation5 + $0x60] sm:$0xff]  ;;  %v70_v4 = vld [vmem:[#allocation5 + $0x58] sm:$0xff]  ;;  %298 = vrcp.f32 %v413_v24  ;;  %s275_s2 = sshll.u32 %s414_s0, 4  ;;  %s277_s30 = sshll.u32 %s458_s3, 4  ;;  %s276_s2 = int_to_ptr.vmem [resolvable:$true] %s275_s2  ;;  %s278_s30 = int_to_ptr.hbm [resolvable:$true] %s277_s30 }
  0x10   :  { %v69_v5 = vld [vmem:[#allocation5 + $0x50] sm:$0xff]  ;;  %v68_v6 = vld [vmem:[#allocation5 + $0x48] sm:$0xff]  ;;  %v67_v7 = vld [vmem:[#allocation5 + $0x40] sm:$0xff] }
  0x11   :  { %78 = vmatpush.msra.mxu0 %v73_v1  ;;  %v66_v8 = vld [vmem:[#allocation5 + $0x38] sm:$0xff]  ;;  %v65_v9 = vld [vmem:[#allocation5 + $0x30] sm:$0xff]  ;;  %v64_v10 = vld [vmem:[#allocation5 + $0x28] sm:$0xff] }
  0x12   :  { %v63_v11 = vld [vmem:[#allocation5 + $0x20] sm:$0xff]  ;;  %v62_v12 = vld [vmem:[#allocation5 + $0x18] sm:$0xff]  ;;  %v61_v13 = vld [vmem:[#allocation5 + $0x10] sm:$0xff] }
  0x13   :  { %79 = vmatpush.msra.mxu0 %v72_v2  ;;  %v60_v14 = vld [vmem:[#allocation5 + $0x8] sm:$0xff]  ;;  %v59_v15 = vld [vmem:[#allocation5] sm:$0xff]  ;;  %v58_v16 = vld [vmem:[#allocation2] sm:$0xff] }
  0x14   :  { %v149_v17 = vld [vmem:[#allocation5 + $0xf8] sm:$0xff]  ;;  %v148_v18 = vld [vmem:[#allocation5 + $0xf0] sm:$0xff]  ;;  %v147_v19 = vld [vmem:[#allocation5 + $0xe8] sm:$0xff] }
  0x15   :  { %80 = vmatpush.msra.mxu0 %v71_v3  ;;  %152 = vmatpush.msra.mxu1 %v149_v17  ;;  %v146_v20 = vld [vmem:[#allocation5 + $0xe0] sm:$0xff]  ;;  %v145_v21 = vld [vmem:[#allocation5 + $0xd8] sm:$0xff]  ;;  %v144_v22 = vld [vmem:[#allocation5 + $0xd0] sm:$0xff]  ;;  %v299_v27 = vpop.eup %298 }
  0x16   :  { %v143_v23 = vld [vmem:[#allocation5 + $0xc8] sm:$0xff]  ;;  %v142_v25 = vld [vmem:[#allocation5 + $0xc0] sm:$0xff]  ;;  %v141_v26 = vld [vmem:[#allocation5 + $0xb8] sm:$0xff]  ;;  %v105_v31 = vmul.f32 8.0, %v299_v27  ;;  %vm109_vm0 = vweird.f32 %v299_v27 }
  0x17   :  { %81 = vmatpush.msra.mxu0 %v70_v4  ;;  %153 = vmatpush.msra.mxu1 %v148_v18  ;;  %v140_v28 = vld [vmem:[#allocation5 + $0xb0] sm:$0xff]  ;;  %v295_v29 = vld [vmem:[#allocation7] ss:$0 sm:$0xff]  ;;  %v139_v30 = vld [vmem:[#allocation5 + $0xa8] sm:$0xff] }
  0x18   :  { %v138_v32 = vld [vmem:[#allocation5 + $0xa0] sm:$0xff]  ;;  %v137_v35 = vld [vmem:[#allocation5 + $0x98] sm:$0xff]  ;;  %v106_v36 = vsub.f32 1.0, %v105_v31  ;;  %v136_v38 = vld [vmem:[#allocation5 + $0x90] sm:$0xff] }
  0x19   :  { %82 = vmatpush.msra.mxu0 %v69_v5  ;;  %154 = vmatpush.msra.mxu1 %v147_v19  ;;  %v135_v40 = vld [vmem:[#allocation5 + $0x88] sm:$0xff]  ;;  %v134_v43 = vld [vmem:[#allocation5 + $0x80] sm:$0xff]  ;;  %v217_v5 = vld [vmem:[#allocation5 + $0x178] sm:$0xff] }
  0x1a   :  { %v107_v41 = vmul.f32 %v299_v27, %v106_v36  ;;  %220 = vmatpush.msra.mxu2 %v217_v5  ;;  %v206_v17 = vld [vmem:[#allocation5 + $0x120] sm:$0xff]  ;;  %v203_v24 = vld [vmem:[#allocation5 + $0x108] sm:$0xff] }
  0x1b   :  { %83 = vmatpush.msra.mxu0 %v68_v6  ;;  %155 = vmatpush.msra.mxu1 %v146_v20  ;;  %v216_v6 = vld [vmem:[#allocation5 + $0x170] sm:$0xff]  ;;  %v205_v20 = vld [vmem:[#allocation5 + $0x118] sm:$0xff] }
  0x1c   :  { %v108_v45 = vadd.f32 %v299_v27, %v107_v41  ;;  %221 = vmatpush.msra.mxu2 %v216_v6 }
  0x1d   :  { %84 = vmatpush.msra.mxu0 %v67_v7  ;;  %156 = vmatpush.msra.mxu1 %v145_v21  ;;  %v215_v7 = vld [vmem:[#allocation5 + $0x168] sm:$0xff] }
  0x1e   :  { %v444_v48 = vsel %vm109_vm0, %v299_v27, %v108_v45  ;;  %222 = vmatpush.msra.mxu2 %v215_v7 }
  0x1f   :  { %85 = vmatpush.msra.mxu0 %v66_v8  ;;  %157 = vmatpush.msra.mxu1 %v144_v22  ;;  %v214_v8 = vld [vmem:[#allocation5 + $0x160] sm:$0xff]  ;;  %v204_v22 = vld [vmem:[#allocation5 + $0x110] sm:$0xff] }
  0x20   :  { %223 = vmatpush.msra.mxu2 %v214_v8 }
  0x21   :  { %86 = vmatpush.msra.mxu0 %v65_v9  ;;  %158 = vmatpush.msra.mxu1 %v143_v23  ;;  %v213_v9 = vld [vmem:[#allocation5 + $0x158] sm:$0xff] }
  0x22   :  { %224 = vmatpush.msra.mxu2 %v213_v9 }
  0x23   :  { %87 = vmatpush.msra.mxu0 %v64_v10  ;;  %159 = vmatpush.msra.mxu1 %v142_v25  ;;  %v212_v10 = vld [vmem:[#allocation5 + $0x150] sm:$0xff] }
  0x24   :  { %225 = vmatpush.msra.mxu2 %v212_v10 }
  0x25   :  { %88 = vmatpush.msra.mxu0 %v63_v11  ;;  %160 = vmatpush.msra.mxu1 %v141_v26  ;;  %v211_v11 = vld [vmem:[#allocation5 + $0x148] sm:$0xff]  ;;  %v202_v26 = vld [vmem:[#allocation5 + $0x100] sm:$0xff] }
  0x26   :  { %226 = vmatpush.msra.mxu2 %v211_v11 }
  0x27   :  { %89 = vmatpush.msra.mxu0 %v62_v12  ;;  %161 = vmatpush.msra.mxu1 %v140_v28  ;;  %v210_v12 = vld [vmem:[#allocation5 + $0x140] sm:$0xff] }
  0x28   :  { %227 = vmatpush.msra.mxu2 %v210_v12 }
  0x29   :  { %90 = vmatpush.msra.mxu0 %v61_v13  ;;  %162 = vmatpush.msra.mxu1 %v139_v30  ;;  %v209_v13 = vld [vmem:[#allocation5 + $0x138] sm:$0xff] }
  0x2a   :  { %228 = vmatpush.msra.mxu2 %v209_v13 }
  0x2b   :  { %91 = vmatpush.msra.mxu0 %v60_v14  ;;  %163 = vmatpush.msra.mxu1 %v138_v32  ;;  %v208_v14 = vld [vmem:[#allocation5 + $0x130] sm:$0xff] }
  0x2c   :  { %229 = vmatpush.msra.mxu2 %v208_v14 }
  0x2d   :  { %92 = vmatpush.msra.mxu0 %v59_v15  ;;  %164 = vmatpush.msra.mxu1 %v137_v35  ;;  %v296_v15 = vld [vmem:[#allocation7 + $0x1] ss:$0 sm:$0xff] }
  0x2e   :  { %93 = vmatmul.f32.vlgmr.msra.gmra.mxu0 %v58_v16  ;;  %v207_v16 = vld [vmem:[#allocation5 + $0x128] sm:$0xff] }
  0x2f   :  { %165 = vmatpush.msra.mxu1 %v136_v38  ;;  %230 = vmatpush.msra.mxu2 %v207_v16 }
  0x31   :  { %166 = vmatpush.msra.mxu1 %v135_v40  ;;  %231 = vmatpush.msra.mxu2 %v206_v17 }
  0x33   :  { %167 = vmatpush.msra.mxu1 %v134_v43  ;;  %232 = vmatpush.msra.mxu2 %v205_v20 }
  0x35   :  { %233 = vmatpush.msra.mxu2 %v204_v22 }
  0x37   :  { %234 = vmatpush.msra.mxu2 %v203_v24 }
  0x39   :  { %235 = vmatpush.msra.mxu2 %v202_v26 }
  0xab   :  { %v94_v33 = vpop.f32.mrf.mxu0 }
  0xac   :  { %v95_v34 = vadd.f32 %v295_v29, %v94_v33 }
  0xae   :  { %v97_v37 = vmax.f32 %v95_v34, 0.0 }
  0xb0   :  { %v98_v39 = vrot.slane %v97_v37, 4 }
  0xb2   :  { %v99_v42 = vadd.f32 %v98_v39, %v97_v37 }
  0xb4   :  { %v100_v44 = vrot.slane %v99_v42, 2 }
  0xb6   :  { %v101_v46 = vadd.f32 %v100_v44, %v99_v42 }
  0xb8   :  { %v102_v47 = vrot.slane %v101_v46, 1 }
  0xba   :  { %v103_v49 = vadd.f32 %v102_v47, %v101_v46 }
  0xbc   :  { %v111_v50 = vmul.f32 %v444_v48, %v103_v49 }
  0xbe   :  { %v112_v51 = vsub.f32 %v97_v37, %v111_v50 }
  0xc0   :  { %v113_v52 = vmul.f32 %v112_v51, %v112_v51 }
  0xc2   :  { %v114_v53 = vrot.slane %v113_v52, 4 }
  0xc4   :  { %v115_v54 = vadd.f32 %v114_v53, %v113_v52 }
  0xc6   :  { %v116_v55 = vrot.slane %v115_v54, 2 }
  0xc8   :  { %v117_v56 = vadd.f32 %v116_v55, %v115_v54 }
  0xca   :  { %v118_v57 = vrot.slane %v117_v56, 1 }
  0xcc   :  { %v119_v58 = vadd.f32 %v118_v57, %v117_v56 }
  0xce   :  { %v120_v59 = vmul.f32 %v119_v58, %v444_v48 }
  0xd0   :  { %v121_v60 = vadd.f32 1e-05, %v120_v59 }
  0xd2   :  { %300 = vrsqrt.f32 %v121_v60  ;;  %vm128_vm2 = vweird.f32 %v121_v60 }
  0xd8   :  { %v301_v61 = vpop.eup %300 }
  0xd9   :  { %v123_v62 = vmul.f32 %v301_v61, %v121_v60  ;;  %vm129_vm1 = vweird.f32 %v301_v61 }
  0xda   :  { %vm130_vm3 = vmor %vm128_vm2, %vm129_vm1 }
  0xdb   :  { %v124_v63 = vmul.f32 %v301_v61, %v123_v62 }
  0xdd   :  { %v125_v0 = vmul.f32 0.5, %v124_v63 }
  0xdf   :  { %v126_v1 = vsub.f32 1.5, %v125_v0 }
  0xe1   :  { %v127_v2 = vmul.f32 %v301_v61, %v126_v1 }
  0xe3   :  { %v131_v3 = vsel %vm130_vm3, %v301_v61, %v127_v2 }
  0xe4   :  { %v132_v4 = vmul.f32 %v131_v3, %v112_v51  ;;  %v297_v51 = vld [vmem:[#allocation7 + $0x2] ss:$0 sm:$0xff] }
  0xe6   :  { %168 = vmatmul.f32.vlgmr.msra.gmra.mxu1 %v132_v4 }
 0x163   :  { %v169_v18 = vpop.f32.mrf.mxu1 }
 0x164   :  { %v170_v19 = vadd.f32 %v296_v15, %v169_v18 }
 0x166   :  { %v172_v21 = vmax.f32 %v170_v19, 0.0 }
 0x168   :  { %v173_v23 = vrot.slane %v172_v21, 4 }
 0x16a   :  { %v174_v25 = vadd.f32 %v173_v23, %v172_v21 }
 0x16c   :  { %v175_v27 = vrot.slane %v174_v25, 2 }
 0x16e   :  { %v176_v28 = vadd.f32 %v175_v27, %v174_v25 }
 0x170   :  { %v177_v29 = vrot.slane %v176_v28, 1 }
 0x172   :  { %v178_v30 = vadd.f32 %v177_v29, %v176_v28 }
 0x174   :  { %v179_v31 = vmul.f32 %v178_v30, %v444_v48 }
 0x176   :  { %v180_v32 = vsub.f32 %v172_v21, %v179_v31 }
 0x178   :  { %v181_v33 = vmul.f32 %v180_v32, %v180_v32 }
 0x17a   :  { %v182_v34 = vrot.slane %v181_v33, 4 }
 0x17c   :  { %v183_v35 = vadd.f32 %v182_v34, %v181_v33 }
 0x17e   :  { %v184_v36 = vrot.slane %v183_v35, 2 }
 0x180   :  { %v185_v37 = vadd.f32 %v184_v36, %v183_v35 }
 0x182   :  { %v186_v38 = vrot.slane %v185_v37, 1 }
 0x184   :  { %v187_v39 = vadd.f32 %v186_v38, %v185_v37 }
 0x186   :  { %v188_v40 = vmul.f32 %v187_v39, %v444_v48 }
 0x188   :  { %v189_v41 = vadd.f32 1e-05, %v188_v40 }
 0x18a   :  { %302 = vrsqrt.f32 %v189_v41  ;;  %vm196_vm5 = vweird.f32 %v189_v41 }
 0x190   :  { %v303_v42 = vpop.eup %302 }
 0x191   :  { %v191_v43 = vmul.f32 %v303_v42, %v189_v41  ;;  %vm197_vm4 = vweird.f32 %v303_v42 }
 0x192   :  { %vm198_vm6 = vmor %vm196_vm5, %vm197_vm4 }
 0x193   :  { %v192_v44 = vmul.f32 %v303_v42, %v191_v43 }
 0x195   :  { %v193_v45 = vmul.f32 0.5, %v192_v44 }
 0x197   :  { %v194_v46 = vsub.f32 1.5, %v193_v45 }
 0x199   :  { %v195_v47 = vmul.f32 %v303_v42, %v194_v46 }
 0x19b   :  { %v199_v49 = vsel %vm198_vm6, %v303_v42, %v195_v47 }
 0x19c   :  { %v200_v50 = vmul.f32 %v199_v49, %v180_v32 }
 0x19e   :  { %236 = vmatmul.f32.vlgmr.msra.gmra.mxu2 %v200_v50 }
 0x221   :  { %v237_v52 = vpop.f32.mrf.mxu2 }
 0x222   :  { %v238_v53 = vadd.f32 %v297_v51, %v237_v52 }
 0x224   :  { %v240_v54 = vmax.f32 %v238_v53, 0.0 }
 0x226   :  { %v241_v55 = vrot.slane %v240_v54, 4 }
 0x228   :  { %v242_v56 = vadd.f32 %v241_v55, %v240_v54 }
 0x22a   :  { %v243_v57 = vrot.slane %v242_v56, 2 }
 0x22c   :  { %v244_v58 = vadd.f32 %v243_v57, %v242_v56 }
 0x22e   :  { %v245_v59 = vrot.slane %v244_v58, 1 }
 0x230   :  { %v246_v60 = vadd.f32 %v245_v59, %v244_v58 }
 0x232   :  { %v247_v61 = vmul.f32 %v246_v60, %v444_v48 }
 0x234   :  { %v248_v62 = vsub.f32 %v240_v54, %v247_v61 }
 0x236   :  { %v249_v63 = vmul.f32 %v248_v62, %v248_v62 }
 0x238   :  { %v250_v0 = vrot.slane %v249_v63, 4 }
 0x23a   :  { %v251_v1 = vadd.f32 %v250_v0, %v249_v63 }
 0x23c   :  { %v252_v2 = vrot.slane %v251_v1, 2 }
 0x23e   :  { %v253_v3 = vadd.f32 %v252_v2, %v251_v1 }
 0x240   :  { %v254_v4 = vrot.slane %v253_v3, 1 }
 0x242   :  { %v255_v5 = vadd.f32 %v254_v4, %v253_v3 }
 0x244   :  { %v256_v6 = vmul.f32 %v255_v5, %v444_v48 }
 0x246   :  { %v257_v7 = vadd.f32 1e-05, %v256_v6 }
 0x248   :  { %304 = vrsqrt.f32 %v257_v7  ;;  %vm264_vm8 = vweird.f32 %v257_v7 }
 0x24e   :  { %v305_v8 = vpop.eup %304 }
 0x24f   :  { %v259_v9 = vmul.f32 %v305_v8, %v257_v7  ;;  %vm265_vm7 = vweird.f32 %v305_v8 }
 0x250   :  { %vm266_vm9 = vmor %vm264_vm8, %vm265_vm7 }
 0x251   :  { %v260_v10 = vmul.f32 %v305_v8, %v259_v9 }
 0x253   :  { %v261_v11 = vmul.f32 0.5, %v260_v10 }
 0x255   :  { %v262_v12 = vsub.f32 1.5, %v261_v11 }
 0x257   :  { %v263_v13 = vmul.f32 %v305_v8, %v262_v12 }
 0x259   :  { %v267_v14 = vsel %vm266_vm9, %v305_v8, %v263_v13 }
 0x25a   :  { %v268_v15 = vmul.f32 %v267_v14, %v248_v62 }
 0x25c   :  { %269 = vst [vmem:[#allocation8] sm:$0xff] %v268_v15 }
 0x25d   :  { %280 = dma.vmem_to_hbm [thread:$0]  %s276_s2, 128, %s278_s30, [#allocation4]  }
 0x25e   :  { %406 = dma.done.wait [#allocation4], 128  }
 0x25f   :  { %407 = vsyncadd [#allocation4], 4294967168 }
 0x260   :  { %285 = vsyncpa [#allocation3], 1 }
 0x261   :  { %286 = vsyncpa [#allocation6], 1 }
 0x262   :  { %287 = vsyncpa [#allocation4], 1 }

</bundles_post_ra>
